<compile_context>
chip_gen: v7x
topology: tpu7x:2x2x1
jax: 0.10.0
libtpu: 0.0.40
codegen_flags: <defaults>
</compile_context>

<pallas_src>
import jax
import jax.numpy as jnp
from jax.experimental import pallas as pl
from jax.experimental.pallas import tpu as pltpu


_SMALL_BYTES = 1 << 20      # below ~1 MiB of data, let XLA fuse the ReLU instead
_MIN_GRID_STEPS = 4         # keep >=2 (ideally 4+) steps: v7x megacore + pipelining


def _relu_kernel(x_ref, o_ref):
    o_ref[...] = jnp.maximum(x_ref[...], jnp.zeros((), x_ref.dtype))


def _round_up(a: int, b: int) -> int:
    return (a + b - 1) // b * b


def _vmem_budget():
    """(target tile bytes, scoped-VMEM limit) derived from this chip's VMEM."""
    try:
        vmem = int(pltpu.get_tpu_info().vmem_capacity_bytes)
    except Exception:
        vmem = 64 << 20  # conservative fallback (v7x-sized VMEM)
    # in + out, each double-buffered -> 4 live tiles; stay well under physical VMEM.
    target_tile = max(1 << 20, min(8 << 20, vmem // 16))
    vmem_limit = int(min(64 << 20, vmem // 2))
    return target_tile, vmem_limit


def _pick_tile_rows(rows: int, lane: int, itemsize: int, target_tile_bytes: int) -> int:
    pack = max(8, 32 // itemsize)          # sublane packing: 8 f32, 16 bf16, 32 int8
    row_bytes = lane * itemsize
    by_bytes = max(pack, (target_tile_bytes // row_bytes) // pack * pack)
    by_depth = _round_up(pl.cdiv(rows, _MIN_GRID_STEPS), pack)
    return max(pack, min(by_bytes, by_depth))


def custom_relu_forward(x, p: float = 0.5, *, force_pallas: bool = False):
    """Forward of CustomReLULayer == F.relu(x). `p` only affects the backward."""
    del p  # backward-only parameter in the original module

    if x.size == 0:
        return x

    itemsize = x.dtype.itemsize
    nbytes = x.size * itemsize
    if not force_pallas and nbytes < _SMALL_BYTES:
        # A standalone custom call can't beat a ReLU XLA fuses into its producer.
        return jnp.maximum(x, jnp.zeros((), x.dtype))

    target_tile_bytes, vmem_limit = _vmem_budget()
    pack = max(8, 32 // itemsize)
    orig_shape = x.shape
    n = x.size

    # Pick a lane-dense 2-D view without introducing any pad / slice copies.
    if (x.ndim >= 2 and orig_shape[-1] % 128 == 0
            and orig_shape[-1] * itemsize * pack <= target_tile_bytes):
        lane = orig_shape[-1]              # native last dim; collapse leading dims
    elif n % 128 == 0:
        lane = 512 if n % 512 == 0 else (256 if n % 256 == 0 else 128)
    else:
        # No 128-aligned factorization: padding + a final slice would add two
        # extra full HBM round trips around a bandwidth-bound kernel, so plain
        # XLA (same 2N bytes of traffic, fully fusible) is strictly faster.
        return jnp.maximum(x, jnp.zeros((), x.dtype))

    rows = n // lane
    slab = x.reshape(rows, lane)

    tile_rows = _pick_tile_rows(rows, lane, itemsize, target_tile_bytes)
    grid = (pl.cdiv(rows, tile_rows),)     # ragged last row-block handled by Pallas

    out = pl.pallas_call(
        _relu_kernel,
        out_shape=jax.ShapeDtypeStruct((rows, lane), x.dtype),
        grid=grid,
        in_specs=[pl.BlockSpec((tile_rows, lane), lambda i: (i, 0))],
        out_specs=pl.BlockSpec((tile_rows, lane), lambda i: (i, 0)),
        compiler_params=pltpu.CompilerParams(
            dimension_semantics=("parallel",),
            vmem_limit_bytes=vmem_limit,
        ),
    )(slab)

    return out.reshape(orig_shape)


if __name__ == "__main__":
    key = jax.random.PRNGKey(0)
    k1, k2, k3, k4, k5 = jax.random.split(key, 5)

    def ref(v):
        return jnp.maximum(v, jnp.zeros((), v.dtype))

    # 1) tiny (batch, hidden) -> small-size fast path (fused XLA elementwise).
    x1 = jax.random.normal(k1, (8, 32), dtype=jnp.float32)
    o1 = jax.block_until_ready(custom_relu_forward(x1, p=0.5))
    assert o1.shape == x1.shape and o1.dtype == x1.dtype
    assert bool(jnp.array_equal(o1, ref(x1)))

    # 2) small but forced through Pallas: native 2-D tiling (last dim already a
    #    multiple of 128 -> no flatten, no padding, unmasked stores).
    x2 = jax.random.normal(k2, (8, 128), dtype=jnp.float32)
    o2 = jax.block_until_ready(custom_relu_forward(x2, p=0.5, force_pallas=True))
    assert o2.shape == x2.shape and o2.dtype == x2.dtype
    assert bool(jnp.array_equal(o2, ref(x2)))

    # 3) last dim not 128-aligned but total size is: lane-dense flatten path,
    #    ragged last row-block handled by the grid (no pad / slice copies).
    x3 = jax.random.normal(k3, (16, 24), dtype=jnp.float32)
    o3 = jax.block_until_ready(custom_relu_forward(x3, p=0.5, force_pallas=True))
    assert o3.shape == x3.shape and o3.dtype == x3.dtype
    assert bool(jnp.array_equal(o3, ref(x3)))

    # 4) bf16 activations: byte-budgeted tile (16-row sublane pack) and a
    #    multi-step parallel grid; dtype preserved (halves HBM bytes moved).
    x4 = jax.random.normal(k4, (64, 256), dtype=jnp.bfloat16)
    o4 = jax.block_until_ready(custom_relu_forward(x4, p=0.5, force_pallas=True))
    assert o4.shape == x4.shape and o4.dtype == jnp.bfloat16
    assert bool(jnp.array_equal(o4, ref(x4)))

    # 5) crosses the dispatch threshold naturally (2 MiB f32) -> tiled Pallas
    #    path with >= 4 parallel grid steps.
    x5 = jax.random.normal(k5, (1024, 512), dtype=jnp.float32)
    o5 = jax.block_until_ready(custom_relu_forward(x5, p=0.5))
    assert o5.shape == x5.shape and o5.dtype == x5.dtype
    assert bool(jnp.array_equal(o5, ref(x5)))

    print("KERNEL_OK")
</pallas_src>

<mosaic_0001>
module attributes {stable_mosaic.version = 11 : i64} {
  func.func @_relu_kernel(%arg0: i32, %arg1: memref<8x128xf32, #tpu.memory_space<vmem>>, %arg2: memref<8x128xf32, #tpu.memory_space<vmem>>) attributes {dimension_semantics = [#tpu.dimension_semantics<parallel>], iteration_bounds = array<i64: 1>, scalar_prefetch = 0 : i64, scratch_operands = 0 : i64, tpu.core_type = #tpu.core_type<tc>, window_params = [{transform_indices = @transform_0, window_bounds = array<i64: 8, 128>}, {transform_indices = @transform_1, window_bounds = array<i64: 8, 128>}]} {
    %c0 = arith.constant 0 : index
    %c0_0 = arith.constant 0 : index
    %0 = vector.load %arg1[%c0, %c0_0] : memref<8x128xf32, #tpu.memory_space<vmem>>, vector<8x128xf32>
    %cst = arith.constant 0.000000e+00 : f32
    %1 = vector.broadcast %cst : f32 to vector<8x128xf32>
    %2 = arith.maximumf %0, %1 : vector<8x128xf32>
    %c0_1 = arith.constant 0 : index
    %c0_2 = arith.constant 0 : index
    %3 = vector.load %arg2[%c0_1, %c0_2] : memref<8x128xf32, #tpu.memory_space<vmem>>, vector<8x128xf32>
    tpu.vector_store %arg2[%c0_1, %c0_2], %2 {strides = array<i32>} : memref<8x128xf32, #tpu.memory_space<vmem>>, vector<8x128xf32>,
    return
  }
  func.func @transform_0(%arg0: i32) -> (i32, i32) {
    %c0_i32 = arith.constant 0 : i32
    %c0_i32_0 = arith.constant 0 : i32
    return %arg0, %c0_i32 : i32, i32
  }
  func.func @transform_1(%arg0: i32) -> (i32, i32) {
    %c0_i32 = arith.constant 0 : i32
    %c0_i32_0 = arith.constant 0 : i32
    return %arg0, %c0_i32 : i32, i32
  }
}

</mosaic_0001>

<bundles_post_ra>
// kernel: tpu_custom_call.1
= control target key start
LH: loop header
LB: loop body
LE: loop exit
PB: predicated region body
PF: predicated region fallthrough
CT: control target
= control target key end

     0   :  { %6 = vsyncpa [#allocation3], 0  ;;  %s125_s0 = inlined_call_operand.hbm [shape: f32[8,128], index: 0, kind: input, shape index: {}]   ;;  %s126_s1 = inlined_call_operand.hbm [shape: f32[8,128], index: 1, kind: output, shape index: {}]  }
   0x1   :  { %7 = vsyncpa [#allocation4], 0  ;;  %s89_s6 = smov [#allocation2]   ;;  %s41_s10 = scalar_lea.hbm %s125_s0, 128 }
   0x2   :  { %s14_s7 = sshll.u32 %s89_s6, 4  ;;  %p42_p0 = scmp.ne.s32.totalorder %s125_s0, %s41_s10  ;;  %s15_s7 = int_to_ptr.vmem [resolvable:$true] %s14_s7 }
   0x3   :  { %p45_p1 = scmp.lt.u32.totalorder %s41_s10, %s125_s0 }
   0x5   :  { %p47_p2 = pnand %p45_p1, %p42_p0 }
   0x7   :  { %50 = shalt.err (!%p47_p2)
}
   0x8   :  { %s51_s15 = scalar_lea.vmem %s15_s7, 128  ;;  %p56_p4 = scmp.lt.s32.totalorder %s15_s7, %s15_s7 }
   0x9   :  { %p52_p3 = scmp.ne.s32.totalorder %s15_s7, %s51_s15  ;;  %p57_p5 = scmp.lt.s32.totalorder %s51_s15, %s51_s15 }
   0xb   :  { %p58_p6 = por %p57_p5, %p56_p4 }
   0xd   :  { %p59_p7 = pnand %p58_p6, %p52_p3 }
   0xf   :  { %62 = shalt.err (!%p59_p7)
}
  0x10   :  { %17 = dma.hbm_to_vmem [thread:$0]  %s125_s0, 128, %s15_s7, [#allocation3]  }
  0x11   :  { %85 = dma.done.wait [#allocation3], 128  }
  0x12   :  { %86 = vsyncadd [#allocation3], 4294967168  ;;  %s90_s18 = smov [#allocation5]   ;;  %v21_v0 = vld [vmem:[#allocation2] sm:$0xff] }
  0x13   :  { %s30_s19 = sshll.u32 %s90_s18, 4  ;;  %v22_v1 = vmax.f32 %v21_v0, 0.0  ;;  %s31_s19 = int_to_ptr.vmem [resolvable:$true] %s30_s19 }
  0x14   :  { %s63_s20 = scalar_lea.vmem %s31_s19, 128  ;;  %p68_p9 = scmp.lt.s32.totalorder %s31_s19, %s31_s19 }
  0x15   :  { %23 = vst [vmem:[#allocation5] sm:$0xff] %v22_v1  ;;  %p64_p8 = scmp.ne.s32.totalorder %s31_s19, %s63_s20  ;;  %p69_p10 = scmp.lt.s32.totalorder %s63_s20, %s63_s20 }
  0x17   :  { %p70_p11 = por %p69_p10, %p68_p9 }
  0x19   :  { %p71_p12 = pnand %p70_p11, %p64_p8 }
  0x1b   :  { %74 = shalt.err (!%p71_p12)
}
  0x1c   :  { %s75_s23 = scalar_lea.hbm %s126_s1, 128 }
  0x1d   :  { %p76_p13 = scmp.ne.s32.totalorder %s126_s1, %s75_s23  ;;  %p79_p0 = scmp.lt.u32.totalorder %s75_s23, %s126_s1 }
  0x1f   :  { %p81_p1 = pnand %p79_p0, %p76_p13 }
  0x21   :  { %84 = shalt.err (!%p81_p1)
}
  0x22   :  { %33 = dma.vmem_to_hbm [thread:$0]  %s31_s19, 128, %s126_s1, [#allocation4]  }
  0x23   :  { %87 = dma.done.wait [#allocation4], 128  }
  0x24   :  { %88 = vsyncadd [#allocation4], 4294967168 }
  0x25   :  { %37 = vsyncpa [#allocation3], 1 }
  0x26   :  { %38 = vsyncpa [#allocation4], 1 }

</bundles_post_ra>
